<compile_context>
chip_gen: v6e
topology: v6e:2x2x1
jax: 0.10.0
libtpu: 0.0.40
codegen_flags: <defaults>
</compile_context>

<pallas_src>
import functools

import jax
import jax.numpy as jnp
from jax import lax
from jax.experimental import pallas as pl
from jax.experimental.pallas import tpu as pltpu


def _mixer_kernel(seed_ref, x_ref, w_ref, o_ref, *, p, training, tile_m):
    # x_ref: [tile_m, F]; w_ref: [E, F] (native PyTorch layout).
    # MXU matmul contracting the shared F axis, f32 accumulation.
    emb = lax.dot_general(
        x_ref[...],
        w_ref[...],
        dimension_numbers=(((1,), (1,)), ((), ())),
        preferred_element_type=jnp.float32,
    )  # [tile_m, E]

    if training and p > 0.0:
        # Inverted dropout with an in-kernel stateless counter hash.
        # (The TPU hardware PRNG primitives have no interpret/CPU lowering, so
        # a murmur3-fmix32 hash of the global element index keeps the mask
        # generation fused in the kernel and portable.)
        # TODO(synk): RNG stream differs from PyTorch's; only the (p, 1/(1-p))
        # distribution matches.
        shape = emb.shape
        row = lax.broadcasted_iota(jnp.uint32, shape, 0)
        col = lax.broadcasted_iota(jnp.uint32, shape, 1)
        row = row + (pl.program_id(0) * tile_m).astype(jnp.uint32)
        ctr = row * jnp.uint32(shape[1]) + col
        h = ctr ^ (seed_ref[0].astype(jnp.uint32) * jnp.uint32(0x9E3779B9))
        h = h ^ (h >> 16)
        h = h * jnp.uint32(0x85EBCA6B)
        h = h ^ (h >> 13)
        h = h * jnp.uint32(0xC2B2AE35)
        h = h ^ (h >> 16)
        # Top 24 bits -> uniform float in [0, 1).
        u = (h >> 8).astype(jnp.float32) * jnp.float32(1.0 / (1 << 24))
        keep = u >= jnp.float32(p)
        emb = jnp.where(keep, emb * jnp.float32(1.0 / (1.0 - p)), 0.0)

    o_ref[...] = emb.astype(o_ref.dtype)


def mixer_forward(features, weight, *, dropout_p, training, seed=0, tile_m=1024):
    """features: [..., feature_dim]; weight: [embed_dim, feature_dim] (PyTorch layout)."""
    orig_shape = features.shape
    feature_dim = orig_shape[-1]
    embed_dim, w_feature_dim = weight.shape
    assert w_feature_dim == feature_dim

    x2d = features.reshape(-1, feature_dim)
    n = x2d.shape[0]

    # Row tile: large (>=512 rows preferred) to amortize per-grid-step overhead
    # and reach the HBM roofline; multiple of 8 (f32 sublane) or the full array.
    if n <= tile_m:
        tile_m = n
        grid = (1,)
    else:
        grid = (pl.cdiv(n, tile_m),)

    seed_arr = jnp.asarray([seed], dtype=jnp.int32)

    kernel = functools.partial(
        _mixer_kernel, p=float(dropout_p), training=bool(training), tile_m=tile_m
    )

    itemsize = jnp.dtype(features.dtype).itemsize
    flops = 2 * n * feature_dim * embed_dim
    bytes_accessed = itemsize * (n * feature_dim + feature_dim * embed_dim + n * embed_dim)

    out = pl.pallas_call(
        kernel,
        out_shape=jax.ShapeDtypeStruct((n, embed_dim), features.dtype),
        grid_spec=pltpu.PrefetchScalarGridSpec(
            num_scalar_prefetch=1,  # dropout seed lands in SMEM
            grid=grid,
            in_specs=[
                # Activation row tile streams through double-buffered VMEM.
                pl.BlockSpec((tile_m, feature_dim), lambda i, seed: (i, 0)),
                # Full weight (E x F, native layout) stays VMEM-resident.
                pl.BlockSpec((embed_dim, feature_dim), lambda i, seed: (0, 0)),
            ],
            out_specs=pl.BlockSpec((tile_m, embed_dim), lambda i, seed: (i, 0)),
        ),
        compiler_params=pltpu.CompilerParams(
            # Row tiles are independent -> shard across v7x's two TensorCores;
            # neutral on single-TC v5e/v6e.
            dimension_semantics=("parallel",),
        ),
        cost_estimate=pl.CostEstimate(
            flops=flops, transcendentals=0, bytes_accessed=bytes_accessed
        ),
    )(seed_arr, x2d, weight)

    return out.reshape(orig_shape[:-1] + (embed_dim,))


if __name__ == "__main__":
    batch, seq = 2, 8
    feature_dim, embed_dim = 32, 128
    dropout_p = 0.1

    key = jax.random.PRNGKey(0)
    k_x, k_w = jax.random.split(key)
    features = jax.random.normal(k_x, (batch, seq, feature_dim), dtype=jnp.float32)
    # Deterministic Linear weight init (Kaiming-uniform-like bound, fixed key).
    bound = 1.0 / (feature_dim ** 0.5)
    weight = jax.random.uniform(
        k_w, (embed_dim, feature_dim), dtype=jnp.float32, minval=-bound, maxval=bound
    )

    # Eval mode (dropout is identity) — compare against plain-JAX reference.
    out_eval = jax.block_until_ready(
        mixer_forward(features, weight, dropout_p=dropout_p, training=False)
    )
    ref = jnp.einsum(
        "bsf,ef->bse", features, weight, precision=jax.lax.Precision.HIGHEST
    )
    assert out_eval.shape == (batch, seq, embed_dim)
    assert jnp.allclose(out_eval, ref, atol=1e-4, rtol=1e-4)

    # Training mode (in-kernel dropout). Only the distribution (drop prob p,
    # survivor scale 1/(1-p)) matches PyTorch, not the RNG stream.
    out_train = jax.block_until_ready(
        mixer_forward(features, weight, dropout_p=dropout_p, training=True, seed=1234)
    )
    assert out_train.shape == (batch, seq, embed_dim)
    # Surviving entries must equal scaled eval output; dropped entries are 0.
    survived = out_train != 0.0  # test artifact: exact matmul zeros count as dropped
    assert jnp.allclose(
        jnp.where(survived, out_train, 0.0),
        jnp.where(survived, ref / (1.0 - dropout_p), 0.0),
        atol=1e-3,
        rtol=1e-3,
    )
    drop_frac = 1.0 - float(jnp.mean(survived.astype(jnp.float32)))
    assert 0.02 <= drop_frac <= 0.30, drop_frac

    print("KERNEL_OK")
</pallas_src>

<mosaic_0001>
module attributes {stable_mosaic.version = 11 : i64} {
  func.func @_mixer_kernel(%arg0: i32, %arg1: memref<1xi32, #tpu.memory_space<smem>>, %arg2: memref<16x32xf32, #tpu.memory_space<vmem>>, %arg3: memref<128x32xf32, #tpu.memory_space<vmem>>, %arg4: memref<16x128xf32, #tpu.memory_space<vmem>>) attributes {dimension_semantics = [#tpu.dimension_semantics<parallel>], iteration_bounds = array<i64: 1>, scalar_prefetch = 1 : i64, scratch_operands = 0 : i64, tpu.core_type = #tpu.core_type<tc>, window_params = [{transform_indices = @transform_0, window_bounds = array<i64: 16, 32>}, {pipeline_mode = #tpu.pipeline_mode<synchronous>, transform_indices = @transform_1, window_bounds = array<i64: 128, 32>}, {transform_indices = @transform_2, window_bounds = array<i64: 16, 128>}]} {
    %c0 = arith.constant 0 : index
    %c0_0 = arith.constant 0 : index
    %0 = vector.load %arg2[%c0, %c0_0] : memref<16x32xf32, #tpu.memory_space<vmem>>, vector<16x32xf32>
    %c0_1 = arith.constant 0 : index
    %c0_2 = arith.constant 0 : index
    %1 = vector.load %arg3[%c0_1, %c0_2] : memref<128x32xf32, #tpu.memory_space<vmem>>, vector<128x32xf32>
    %cst = arith.constant dense<0.000000e+00> : vector<16x128xf32>
    %2 = tpu.matmul %0, %1, %cst {dimension_numbers = #tpu.dot_dimension_numbers<[1], [1], [0], [0], [0, 0, 1, 0], [], []>} : vector<16x32xf32>, vector<128x32xf32>, vector<16x128xf32> -> vector<16x128xf32>
    %c0_3 = arith.constant 0 : index
    %c0_4 = arith.constant 0 : index
    %3 = vector.load %arg4[%c0_3, %c0_4] : memref<16x128xf32, #tpu.memory_space<vmem>>, vector<16x128xf32>
    tpu.vector_store %arg4[%c0_3, %c0_4], %2 {strides = array<i32>} : memref<16x128xf32, #tpu.memory_space<vmem>>, vector<16x128xf32>,
    return
  }
  func.func @transform_0(%arg0: i32, %arg1: memref<1xi32, #tpu.memory_space<smem>>) -> (i32, i32) {
    %c0_i32 = arith.constant 0 : i32
    %c0_i32_0 = arith.constant 0 : i32
    return %arg0, %c0_i32 : i32, i32
  }
  func.func @transform_1(%arg0: i32, %arg1: memref<1xi32, #tpu.memory_space<smem>>) -> (i32, i32) {
    %c0_i32 = arith.constant 0 : i32
    %c0_i32_0 = arith.constant 0 : i32
    %c0_i32_1 = arith.constant 0 : i32
    return %c0_i32, %c0_i32_0 : i32, i32
  }
  func.func @transform_2(%arg0: i32, %arg1: memref<1xi32, #tpu.memory_space<smem>>) -> (i32, i32) {
    %c0_i32 = arith.constant 0 : i32
    %c0_i32_0 = arith.constant 0 : i32
    return %arg0, %c0_i32 : i32, i32
  }
}

</mosaic_0001>

<bundles_post_ra>
// kernel: tpu_custom_call.1
= control target key start
LH: loop header
LB: loop body
LE: loop exit
PB: predicated region body
PF: predicated region fallthrough
CT: control target
= control target key end

     0   :  { %vm32_vm0 = vcmask 261120   ;;  %s390_s0 = inlined_call_operand.<no memory space> [shape: s32[1], index: 0, kind: input, shape index: {}]   ;;  %s391_s1 = inlined_call_operand.vmem [shape: f32[16,32], index: 1, kind: input, shape index: {}]   ;;  %s392_s2 = inlined_call_operand.vmem [shape: f32[128,32], index: 2, kind: input, shape index: {}]   ;;  %s393_s3 = inlined_call_operand.hbm [shape: f32[16,128], index: 3, kind: output, shape index: {}]  }
   0x1   :  { %v31_v0 = vld [vmem:[%s392_s2 + $0x78] sm:$0xff]  ;;  %v30_v1 = vld [vmem:[%s392_s2 + $0x70] sm:$0xff]  ;;  %v29_v2 = vld [vmem:[%s392_s2 + $0x68] sm:$0xff] }
   0x2   :  { %216 = vmatprep.subr.msk.mxu0 %vm32_vm0, %v31_v0  ;;  %v14_v3 = vld [vmem:[%s391_s1] sm:$0xff] }
   0x3   :  { %217 = vmatpush3.xpose.msk.msra.mxu0 %vm32_vm0, %v31_v0  ;;  %248 = vmatprep.mubr.msk.f32.mxu0 %vm32_vm0, %v14_v3 }
   0x4   :  { %218 = vmatprep.subr.msk.mxu0 %vm32_vm0, %v30_v1 }
   0x7   :  { %219 = vmatpush3.xpose.msk.msra.mxu0 %vm32_vm0, %v30_v1 }
   0x8   :  { %9 = vsyncpa [#allocation5], 0  ;;  %220 = vmatprep.subr.msk.mxu0 %vm32_vm0, %v29_v2  ;;  %v28_v4 = vld [vmem:[%s392_s2 + $0x60] sm:$0xff]  ;;  %v27_v5 = vld [vmem:[%s392_s2 + $0x58] sm:$0xff]  ;;  %s276_s19 = smov [#allocation4]  }
   0x9   :  { %v26_v6 = vld [vmem:[%s392_s2 + $0x50] sm:$0xff]  ;;  %v25_v7 = vld [vmem:[%s392_s2 + $0x48] sm:$0xff]  ;;  %v24_v8 = vld [vmem:[%s392_s2 + $0x40] sm:$0xff]  ;;  %s169_s20 = sshll.u32 %s276_s19, 4  ;;  %s170_s20 = int_to_ptr.vmem [resolvable:$true] %s169_s20 }
   0xa   :  { %v23_v9 = vld [vmem:[%s392_s2 + $0x38] sm:$0xff]  ;;  %v22_v10 = vld [vmem:[%s392_s2 + $0x30] sm:$0xff]  ;;  %v21_v11 = vld [vmem:[%s392_s2 + $0x28] sm:$0xff]  ;;  %p259_p1 = scmp.lt.s32.totalorder %s170_s20, %s170_s20 }
   0xb   :  { %221 = vmatpush3.xpose.msk.msra.mxu0 %vm32_vm0, %v29_v2  ;;  %v20_v12 = vld [vmem:[%s392_s2 + $0x20] sm:$0xff]  ;;  %v19_v13 = vld [vmem:[%s392_s2 + $0x18] sm:$0xff]  ;;  %v18_v14 = vld [vmem:[%s392_s2 + $0x10] sm:$0xff] }
   0xc   :  { %222 = vmatprep.subr.msk.mxu0 %vm32_vm0, %v28_v4  ;;  %v17_v15 = vld [vmem:[%s392_s2 + $0x8] sm:$0xff]  ;;  %v16_v16 = vld [vmem:[%s392_s2] sm:$0xff]  ;;  %s254_s2 = scalar_lea.vmem %s170_s20, 256 }
   0xd   :  { %v15_v17 = vld [vmem:[%s391_s1 + $0x8] sm:$0xff]  ;;  %p255_p0 = scmp.ne.s32.totalorder %s170_s20, %s254_s2  ;;  %p260_p2 = scmp.lt.s32.totalorder %s254_s2, %s254_s2 }
   0xf   :  { %223 = vmatpush3.xpose.msk.msra.mxu0 %vm32_vm0, %v28_v4  ;;  %p261_p3 = por %p260_p2, %p259_p1 }
  0x10   :  { %224 = vmatprep.subr.msk.mxu0 %vm32_vm0, %v27_v5 }
  0x11   :  { %p262_p4 = pnand %p261_p3, %p255_p0 }
  0x13   :  { %225 = vmatpush3.xpose.msk.msra.mxu0 %vm32_vm0, %v27_v5 }
  0x14   :  { %226 = vmatprep.subr.msk.mxu0 %vm32_vm0, %v26_v6 }
  0x17   :  { %227 = vmatpush3.xpose.msk.msra.mxu0 %vm32_vm0, %v26_v6 }
  0x18   :  { %228 = vmatprep.subr.msk.mxu0 %vm32_vm0, %v25_v7 }
  0x1b   :  { %229 = vmatpush3.xpose.msk.msra.mxu0 %vm32_vm0, %v25_v7 }
  0x1c   :  { %230 = vmatprep.subr.msk.mxu0 %vm32_vm0, %v24_v8 }
  0x1f   :  { %231 = vmatpush3.xpose.msk.msra.mxu0 %vm32_vm0, %v24_v8 }
  0x20   :  { %232 = vmatprep.subr.msk.mxu0 %vm32_vm0, %v23_v9 }
  0x23   :  { %233 = vmatpush3.xpose.msk.msra.mxu0 %vm32_vm0, %v23_v9 }
  0x24   :  { %234 = vmatprep.subr.msk.mxu0 %vm32_vm0, %v22_v10 }
  0x27   :  { %235 = vmatpush3.xpose.msk.msra.mxu0 %vm32_vm0, %v22_v10 }
  0x28   :  { %236 = vmatprep.subr.msk.mxu0 %vm32_vm0, %v21_v11 }
  0x2b   :  { %237 = vmatpush3.xpose.msk.msra.mxu0 %vm32_vm0, %v21_v11 }
  0x2c   :  { %238 = vmatprep.subr.msk.mxu0 %vm32_vm0, %v20_v12 }
  0x2f   :  { %239 = vmatpush3.xpose.msk.msra.mxu0 %vm32_vm0, %v20_v12 }
  0x30   :  { %240 = vmatprep.subr.msk.mxu0 %vm32_vm0, %v19_v13 }
  0x33   :  { %241 = vmatpush3.xpose.msk.msra.mxu0 %vm32_vm0, %v19_v13 }
  0x34   :  { %242 = vmatprep.subr.msk.mxu0 %vm32_vm0, %v18_v14 }
  0x37   :  { %243 = vmatpush3.xpose.msk.msra.mxu0 %vm32_vm0, %v18_v14 }
  0x38   :  { %244 = vmatprep.subr.msk.mxu0 %vm32_vm0, %v17_v15 }
  0x3b   :  { %245 = vmatpush3.xpose.msk.msra.mxu0 %vm32_vm0, %v17_v15 }
  0x3c   :  { %246 = vmatprep.subr.msk.mxu0 %vm32_vm0, %v16_v16 }
  0x3f   :  { %247 = vmatpush3.xpose.msk.msra.mxu0 %vm32_vm0, %v16_v16 }
  0x42   :  { %249 = vmatmul.mubr.msk.f32.vlgmr.msra.gmra.mxu0 %vm32_vm0, %v15_v17 }
 0x102   :  { %v250_v18 = vpop.f32.mrf.mxu0 }
 0x103   :  { %163 = vst [vmem:[#allocation4 + $0x8] sm:$0xff] %v250_v18 }
 0x104   :  { %v153_v19 = vpop.f32.mrf.mxu0 }
 0x105   :  { %162 = vst [vmem:[#allocation4] sm:$0xff] %v153_v19 }
 0x106   :  { %265 = shalt.err (!%p262_p4)
}
 0x107   :  { %s277_s21 = smov 128   ;;  %s278_s22 = smov 8  }
 0x108   :  { %175 = dma.vmem_to_hbm [thread:$0]  %s170_s20, 256, %s393_s3, [#allocation5], %s277_s21, %s277_s21, %s278_s22  }
 0x109   :  { %274 = dma.done.wait [#allocation5], 256  }
 0x10a   :  { %275 = vsyncadd [#allocation5], 4294967040 }
 0x10b   :  { %179 = vsyncpa [#allocation5], 1 }

</bundles_post_ra>
